<compile_context>
chip_gen: v7x
topology: tpu7x:2x2x1
jax: 0.10.0
libtpu: 0.0.40
codegen_flags: <defaults>
</compile_context>

<pallas_src>
import functools

import jax
import jax.numpy as jnp
from jax.experimental import pallas as pl
from jax.experimental.pallas import tpu as pltpu

NEG_SLOPE = 0.01   # nn.LeakyReLU default
BN_EPS = 1e-5      # nn.BatchNorm2d default


def _leaky(v):
    return jnp.where(v >= 0, v, NEG_SLOPE * v)


def _fused_residual_kernel(C, x_ref, w1_ref, b1_ref, w2_ref, gamma_ref, beta_ref,
                           pool_ref, out_ref, pad_ref):
    """Fused conv1+LeakyReLU -> conv2 -> BN(train) -> +residual -> LeakyReLU.

    x_ref    : (N, H, WC)     lane-dense input (C fastest within a lane row)
    w1_ref   : (3, WC, WC)    bf16 folded conv1 weight (dx taps + horiz. padding baked in)
    b1_ref   : (1, WC)        conv1 bias tiled over the W lane-groups (f32)
    w2_ref   : (3, WC, WC)    bf16 folded conv2 weight (bias omitted: cancelled by BN mean)
    gamma_ref, beta_ref : (1, WC) BN affine, tiled over W lane-groups (f32)
    pool_ref : (WC, WC)       kron(ones(W,W), eye(C)) -- per-channel sum + broadcast (f32)
    out_ref  : (N, H, WC)     lane-dense output
    pad_ref  : (N, H_pad, WC) f32 halo scratch (rows 0 and H+1 zero; reused by both convs)
    """
    N, H, WC = x_ref.shape
    W = WC // C
    M = N * H
    inv_cnt = 1.0 / float(N * H * W)

    # Zero the top/bottom halo rows once (rows beyond H+1 are never read).
    zero_row = jnp.zeros((N, 1, WC), jnp.float32)
    pad_ref[:, 0:1, :] = zero_row
    pad_ref[:, H + 1:H + 2, :] = zero_row

    def conv3x3(w_ref):
        # Three accumulating matmuls over the vertical taps; horizontal taps and
        # left/right zero padding live inside the folded weight blocks.
        # bf16 operands, f32 accumulation (MXU-native).
        acc = jnp.dot(pad_ref[:, 0:H, :].reshape(M, WC).astype(jnp.bfloat16),
                      w_ref[0], preferred_element_type=jnp.float32)
        acc = acc + jnp.dot(pad_ref[:, 1:H + 1, :].reshape(M, WC).astype(jnp.bfloat16),
                            w_ref[1], preferred_element_type=jnp.float32)
        acc = acc + jnp.dot(pad_ref[:, 2:H + 2, :].reshape(M, WC).astype(jnp.bfloat16),
                            w_ref[2], preferred_element_type=jnp.float32)
        return acc

    # ---- conv1 + bias + LeakyReLU -------------------------------------------------
    pad_ref[:, 1:H + 1, :] = x_ref[...]
    h = _leaky(conv3x3(w1_ref) + b1_ref[...])

    # ---- conv2 (bias omitted: a per-channel constant is exactly removed by the
    # training-mode BN mean subtraction).  Reuse the same halo scratch. ------------
    pad_ref[:, 1:H + 1, :] = h.reshape(N, H, WC)
    a = conv3x3(w2_ref)

    # ---- BatchNorm2d, training mode (batch stats, biased variance) ----------------
    # One fused (2, WC) @ (WC, WC) pooling matmul: row 0 = sum, row 1 = sum of squares.
    col = jnp.concatenate([jnp.sum(a, axis=0, keepdims=True),
                           jnp.sum(a * a, axis=0, keepdims=True)], axis=0)
    stats = jnp.dot(col, pool_ref[...], preferred_element_type=jnp.float32) * inv_cnt
    mean = stats[0:1, :]
    var = jnp.maximum(stats[1:2, :] - mean * mean, 0.0)
    scale = jax.lax.rsqrt(var + BN_EPS) * gamma_ref[...]     # reassociated on (1, WC)
    y = (a - mean) * scale + beta_ref[...]

    # ---- residual add (late x reload) + LeakyReLU, lane-dense store ---------------
    o = _leaky(y + x_ref[...].reshape(M, WC))
    out_ref[...] = o.reshape(N, H, WC)


def _fold_conv_weight(w_kkio, W):
    """(3, 3, Cin, Cout) conv weight -> (3, W*Cin, W*Cout) bf16 matmul weight blocks.

    Block ky holds sum_kx kron(eye(W, k=1-kx), w[ky, kx]); the off-diagonal shift
    implements the dx tap and the truncated border implements the horizontal zero
    padding exactly.
    """
    C = w_kkio.shape[-1]
    blocks = []
    for ky in range(3):
        blk = jnp.zeros((W * C, W * C), jnp.float32)
        for kx in range(3):
            shift = jnp.eye(W, k=1 - kx, dtype=jnp.float32)
            blk = blk + jnp.kron(shift, w_kkio[ky, kx].astype(jnp.float32))
        blocks.append(blk)
    return jnp.stack(blocks, axis=0).astype(jnp.bfloat16)


def residual_layer_forward(x_nchw, params):
    """Forward pass of ResidualLayer.  x_nchw: (N, C, H, W) float32 (PyTorch layout)."""
    N, C, H, W = x_nchw.shape
    WC = W * C
    assert WC % 128 == 0, "keep the lane dim a multiple of 128 (lane-dense invariant)"
    H_pad = ((H + 2 + 7) // 8) * 8          # halo scratch rows, multiple of 8

    # Layout plumbing (wrapper side): NCHW -> NHWC -> lane-dense (N, H, W*C).
    x = jnp.transpose(x_nchw, (0, 2, 3, 1)).reshape(N, H, WC)

    w1 = _fold_conv_weight(params["w1"], W)                       # (3, WC, WC) bf16
    w2 = _fold_conv_weight(params["w2"], W)                       # (3, WC, WC) bf16
    b1 = jnp.tile(params["b1"].reshape(1, C), (1, W))             # (1, WC) f32
    gamma = jnp.tile(params["gamma2"].reshape(1, C), (1, W))      # (1, WC) f32
    beta = jnp.tile(params["beta2"].reshape(1, C), (1, W))        # (1, WC) f32
    pool = jnp.kron(jnp.ones((W, W), jnp.float32),
                    jnp.eye(C, dtype=jnp.float32))                # (WC, WC) f32
    # params["b2"] intentionally not passed: cancelled exactly by train-mode BN.

    # VMEM budget from actual buffer sizes (+headroom), valid on v5e/v6e/v7x.
    buf_bytes = (x.size * 4 + w1.size * 2 + w2.size * 2 + pool.size * 4
                 + 3 * WC * 4                       # b1 / gamma / beta
                 + N * H * WC * 4                   # output
                 + N * H_pad * WC * 4)              # halo scratch
    vmem_limit = int(min(96 * 2**20, max(8 * 2**20, 8 * buf_bytes)))

    vmem = lambda: pl.BlockSpec(memory_space=pltpu.MemorySpace.VMEM)
    out = pl.pallas_call(
        functools.partial(_fused_residual_kernel, C),
        out_shape=jax.ShapeDtypeStruct((N, H, WC), jnp.float32),
        in_specs=[vmem() for _ in range(7)],
        out_specs=vmem(),
        scratch_shapes=[pltpu.VMEM((N, H_pad, WC), jnp.float32)],
        compiler_params=pltpu.CompilerParams(vmem_limit_bytes=vmem_limit),
    )(x, w1, b1, w2, gamma, beta, pool)

    return jnp.transpose(out.reshape(N, H, W, C), (0, 3, 1, 2))   # back to NCHW


def init_params(key, in_channels):
    """Deterministic synthetic parameters (shapes mirror the PyTorch module)."""
    c = in_channels
    k1, k2, k3, k4 = jax.random.split(key, 4)
    scale = 1.0 / jnp.sqrt(9.0 * c)  # ~ PyTorch Conv2d default init scale
    # Conv weights stored as (ky, kx, cin, cout); a PyTorch (cout, cin, kh, kw)
    # weight maps here via w_pt.transpose(2, 3, 1, 0).
    w1 = scale * jax.random.normal(k1, (3, 3, c, c), jnp.float32)
    w2 = scale * jax.random.normal(k2, (3, 3, c, c), jnp.float32)
    b1 = scale * jax.random.normal(k3, (c,), jnp.float32)
    b2 = scale * jax.random.normal(k4, (c,), jnp.float32)  # no-op before train-mode BN
    gamma2 = jnp.ones((c,), jnp.float32)    # BatchNorm default affine init
    beta2 = jnp.zeros((c,), jnp.float32)
    return {"w1": w1, "b1": b1, "w2": w2, "b2": b2,
            "gamma2": gamma2, "beta2": beta2}


def _reference_forward(x, params):
    """Pure-JAX reference of the PyTorch module (train-mode BN, includes b2)."""
    dn = ("NCHW", "HWIO", "NCHW")
    conv = lambda v, w: jax.lax.conv_general_dilated(
        v, w, window_strides=(1, 1), padding=((1, 1), (1, 1)), dimension_numbers=dn)
    h = conv(x, params["w1"]) + params["b1"][None, :, None, None]
    h = _leaky(h)
    a = conv(h, params["w2"]) + params["b2"][None, :, None, None]
    mean = jnp.mean(a, axis=(0, 2, 3), keepdims=True)
    var = jnp.mean((a - mean) ** 2, axis=(0, 2, 3), keepdims=True)  # biased
    y = (a - mean) * jax.lax.rsqrt(var + BN_EPS) \
        * params["gamma2"][None, :, None, None] + params["beta2"][None, :, None, None]
    return _leaky(y + x)


if __name__ == "__main__":
    key = jax.random.PRNGKey(0)
    kx, kp = jax.random.split(key)

    N, C, H, W = 2, 8, 16, 16          # W*C = 128 -> fully lane-dense kernel I/O
    x = jax.random.normal(kx, (N, C, H, W), jnp.float32)   # NCHW, like PyTorch
    params = init_params(kp, C)

    out = jax.jit(residual_layer_forward)(x, params)
    out = jax.block_until_ready(out)
    assert out.shape == (N, C, H, W) and out.dtype == jnp.float32
    assert bool(jnp.all(jnp.isfinite(out)))

    # Correctness vs. pure-JAX reference (loose tolerance: bf16 MXU operands).
    ref = _reference_forward(x, params)
    max_err = float(jnp.max(jnp.abs(out - ref)))
    assert max_err < 1e-1, f"max abs err vs reference: {max_err}"

    print("KERNEL_OK")
</pallas_src>

<mosaic_0001>
module attributes {stable_mosaic.version = 11 : i64} {
  func.func @_fused_residual_kernel(%arg0: memref<2x16x128xf32, #tpu.memory_space<vmem>>, %arg1: memref<3x128x128xbf16, #tpu.memory_space<vmem>>, %arg2: memref<1x128xf32, #tpu.memory_space<vmem>>, %arg3: memref<3x128x128xbf16, #tpu.memory_space<vmem>>, %arg4: memref<1x128xf32, #tpu.memory_space<vmem>>, %arg5: memref<1x128xf32, #tpu.memory_space<vmem>>, %arg6: memref<128x128xf32, #tpu.memory_space<vmem>>, %arg7: memref<2x16x128xf32, #tpu.memory_space<vmem>>, %arg8: memref<2x24x128xf32, #tpu.memory_space<vmem>>) attributes {dimension_semantics = [], scalar_prefetch = 0 : i64, scratch_operands = 1 : i64, tpu.core_type = #tpu.core_type<tc>} {
    %cst = arith.constant 0.000000e+00 : f32
    %0 = vector.broadcast %cst : f32 to vector<2x1x128xf32>
    %c0 = arith.constant 0 : index
    %c0_0 = arith.constant 0 : index
    %c0_1 = arith.constant 0 : index
    %1 = vector.load %arg8[%c0, %c0_0, %c0_1] : memref<2x24x128xf32, #tpu.memory_space<vmem>>, vector<2x1x128xf32>
    tpu.vector_store %arg8[%c0, %c0_0, %c0_1], %0 {strides = array<i32>} : memref<2x24x128xf32, #tpu.memory_space<vmem>>, vector<2x1x128xf32>,
    %c0_2 = arith.constant 0 : index
    %c17 = arith.constant 17 : index
    %c0_3 = arith.constant 0 : index
    %2 = vector.load %arg8[%c0_2, %c17, %c0_3] : memref<2x24x128xf32, #tpu.memory_space<vmem>>, vector<2x1x128xf32>
    tpu.vector_store %arg8[%c0_2, %c17, %c0_3], %0 {strides = array<i32>} : memref<2x24x128xf32, #tpu.memory_space<vmem>>, vector<2x1x128xf32>,
    %c0_4 = arith.constant 0 : index
    %c0_5 = arith.constant 0 : index
    %c0_6 = arith.constant 0 : index
    %3 = vector.load %arg0[%c0_4, %c0_5, %c0_6] : memref<2x16x128xf32, #tpu.memory_space<vmem>>, vector<2x16x128xf32>
    %c0_7 = arith.constant 0 : index
    %c1 = arith.constant 1 : index
    %c0_8 = arith.constant 0 : index
    %4 = vector.load %arg8[%c0_7, %c1, %c0_8] : memref<2x24x128xf32, #tpu.memory_space<vmem>>, vector<2x16x128xf32>
    tpu.vector_store %arg8[%c0_7, %c1, %c0_8], %3 {strides = array<i32>} : memref<2x24x128xf32, #tpu.memory_space<vmem>>, vector<2x16x128xf32>,
    %c0_9 = arith.constant 0 : index
    %c0_10 = arith.constant 0 : index
    %c0_11 = arith.constant 0 : index
    %5 = vector.load %arg8[%c0_9, %c0_10, %c0_11] : memref<2x24x128xf32, #tpu.memory_space<vmem>>, vector<2x16x128xf32>
    %6 = vector.shape_cast %5 : vector<2x16x128xf32> to vector<32x128xf32>
    %7 = arith.truncf %6 : vector<32x128xf32> to vector<32x128xbf16>
    %c0_12 = arith.constant 0 : index
    %c0_13 = arith.constant 0 : index
    %c0_14 = arith.constant 0 : index
    %8 = vector.load %arg1[%c0_12, %c0_13, %c0_14] : memref<3x128x128xbf16, #tpu.memory_space<vmem>>, vector<1x128x128xbf16>
    %9 = vector.shape_cast %8 : vector<1x128x128xbf16> to vector<128x128xbf16>
    %cst_15 = arith.constant dense<0.000000e+00> : vector<32x128xf32>
    %10 = tpu.matmul %7, %9, %cst_15 {dimension_numbers = #tpu.dot_dimension_numbers<[1], [0], [0], [1], [0, 0, 1, 1], [], []>} : vector<32x128xbf16>, vector<128x128xbf16>, vector<32x128xf32> -> vector<32x128xf32>
    %c0_16 = arith.constant 0 : index
    %c1_17 = arith.constant 1 : index
    %c0_18 = arith.constant 0 : index
    %11 = vector.load %arg8[%c0_16, %c1_17, %c0_18] : memref<2x24x128xf32, #tpu.memory_space<vmem>>, vector<2x16x128xf32>
    %12 = vector.shape_cast %11 : vector<2x16x128xf32> to vector<32x128xf32>
    %13 = arith.truncf %12 : vector<32x128xf32> to vector<32x128xbf16>
    %c1_19 = arith.constant 1 : index
    %c0_20 = arith.constant 0 : index
    %c0_21 = arith.constant 0 : index
    %14 = vector.load %arg1[%c1_19, %c0_20, %c0_21] : memref<3x128x128xbf16, #tpu.memory_space<vmem>>, vector<1x128x128xbf16>
    %15 = vector.shape_cast %14 : vector<1x128x128xbf16> to vector<128x128xbf16>
    %cst_22 = arith.constant dense<0.000000e+00> : vector<32x128xf32>
    %16 = tpu.matmul %13, %15, %cst_22 {dimension_numbers = #tpu.dot_dimension_numbers<[1], [0], [0], [1], [0, 0, 1, 1], [], []>} : vector<32x128xbf16>, vector<128x128xbf16>, vector<32x128xf32> -> vector<32x128xf32>
    %17 = arith.addf %10, %16 : vector<32x128xf32>
    %c0_23 = arith.constant 0 : index
    %c2 = arith.constant 2 : index
    %c0_24 = arith.constant 0 : index
    %18 = vector.load %arg8[%c0_23, %c2, %c0_24] : memref<2x24x128xf32, #tpu.memory_space<vmem>>, vector<2x16x128xf32>
    %19 = vector.shape_cast %18 : vector<2x16x128xf32> to vector<32x128xf32>
    %20 = arith.truncf %19 : vector<32x128xf32> to vector<32x128xbf16>
    %c2_25 = arith.constant 2 : index
    %c0_26 = arith.constant 0 : index
    %c0_27 = arith.constant 0 : index
    %21 = vector.load %arg1[%c2_25, %c0_26, %c0_27] : memref<3x128x128xbf16, #tpu.memory_space<vmem>>, vector<1x128x128xbf16>
    %22 = vector.shape_cast %21 : vector<1x128x128xbf16> to vector<128x128xbf16>
    %cst_28 = arith.constant dense<0.000000e+00> : vector<32x128xf32>
    %23 = tpu.matmul %20, %22, %cst_28 {dimension_numbers = #tpu.dot_dimension_numbers<[1], [0], [0], [1], [0, 0, 1, 1], [], []>} : vector<32x128xbf16>, vector<128x128xbf16>, vector<32x128xf32> -> vector<32x128xf32>
    %24 = arith.addf %17, %23 : vector<32x128xf32>
    %c0_29 = arith.constant 0 : index
    %c0_30 = arith.constant 0 : index
    %25 = vector.load %arg2[%c0_29, %c0_30] : memref<1x128xf32, #tpu.memory_space<vmem>>, vector<1x128xf32>
    %26 = vector.broadcast %25 : vector<1x128xf32> to vector<32x128xf32>
    %27 = arith.addf %24, %26 : vector<32x128xf32>
    %cst_31 = arith.constant 0.000000e+00 : f32
    %28 = vector.broadcast %cst_31 : f32 to vector<32x128xf32>
    %29 = arith.cmpf oge, %27, %28 : vector<32x128xf32>
    %cst_32 = arith.constant 0.00999999977 : f32
    %30 = vector.broadcast %cst_32 : f32 to vector<32x128xf32>
    %31 = arith.mulf %30, %27 : vector<32x128xf32>
    %32 = arith.select %29, %27, %31 : vector<32x128xi1>, vector<32x128xf32>
    %33 = vector.shape_cast %32 : vector<32x128xf32> to vector<2x16x128xf32>
    %c0_33 = arith.constant 0 : index
    %c1_34 = arith.constant 1 : index
    %c0_35 = arith.constant 0 : index
    %34 = vector.load %arg8[%c0_33, %c1_34, %c0_35] : memref<2x24x128xf32, #tpu.memory_space<vmem>>, vector<2x16x128xf32>
    tpu.vector_store %arg8[%c0_33, %c1_34, %c0_35], %33 {strides = array<i32>} : memref<2x24x128xf32, #tpu.memory_space<vmem>>, vector<2x16x128xf32>,
    %c0_36 = arith.constant 0 : index
    %c0_37 = arith.constant 0 : index
    %c0_38 = arith.constant 0 : index
    %35 = vector.load %arg8[%c0_36, %c0_37, %c0_38] : memref<2x24x128xf32, #tpu.memory_space<vmem>>, vector<2x16x128xf32>
    %36 = vector.shape_cast %35 : vector<2x16x128xf32> to vector<32x128xf32>
    %37 = arith.truncf %36 : vector<32x128xf32> to vector<32x128xbf16>
    %c0_39 = arith.constant 0 : index
    %c0_40 = arith.constant 0 : index
    %c0_41 = arith.constant 0 : index
    %38 = vector.load %arg3[%c0_39, %c0_40, %c0_41] : memref<3x128x128xbf16, #tpu.memory_space<vmem>>, vector<1x128x128xbf16>
    %39 = vector.shape_cast %38 : vector<1x128x128xbf16> to vector<128x128xbf16>
    %cst_42 = arith.constant dense<0.000000e+00> : vector<32x128xf32>
    %40 = tpu.matmul %37, %39, %cst_42 {dimension_numbers = #tpu.dot_dimension_numbers<[1], [0], [0], [1], [0, 0, 1, 1], [], []>} : vector<32x128xbf16>, vector<128x128xbf16>, vector<32x128xf32> -> vector<32x128xf32>
    %c0_43 = arith.constant 0 : index
    %c1_44 = arith.constant 1 : index
    %c0_45 = arith.constant 0 : index
    %41 = vector.load %arg8[%c0_43, %c1_44, %c0_45] : memref<2x24x128xf32, #tpu.memory_space<vmem>>, vector<2x16x128xf32>
    %42 = vector.shape_cast %41 : vector<2x16x128xf32> to vector<32x128xf32>
    %43 = arith.truncf %42 : vector<32x128xf32> to vector<32x128xbf16>
    %c1_46 = arith.constant 1 : index
    %c0_47 = arith.constant 0 : index
    %c0_48 = arith.constant 0 : index
    %44 = vector.load %arg3[%c1_46, %c0_47, %c0_48] : memref<3x128x128xbf16, #tpu.memory_space<vmem>>, vector<1x128x128xbf16>
    %45 = vector.shape_cast %44 : vector<1x128x128xbf16> to vector<128x128xbf16>
    %cst_49 = arith.constant dense<0.000000e+00> : vector<32x128xf32>
    %46 = tpu.matmul %43, %45, %cst_49 {dimension_numbers = #tpu.dot_dimension_numbers<[1], [0], [0], [1], [0, 0, 1, 1], [], []>} : vector<32x128xbf16>, vector<128x128xbf16>, vector<32x128xf32> -> vector<32x128xf32>
    %47 = arith.addf %40, %46 : vector<32x128xf32>
    %c0_50 = arith.constant 0 : index
    %c2_51 = arith.constant 2 : index
    %c0_52 = arith.constant 0 : index
    %48 = vector.load %arg8[%c0_50, %c2_51, %c0_52] : memref<2x24x128xf32, #tpu.memory_space<vmem>>, vector<2x16x128xf32>
    %49 = vector.shape_cast %48 : vector<2x16x128xf32> to vector<32x128xf32>
    %50 = arith.truncf %49 : vector<32x128xf32> to vector<32x128xbf16>
    %c2_53 = arith.constant 2 : index
    %c0_54 = arith.constant 0 : index
    %c0_55 = arith.constant 0 : index
    %51 = vector.load %arg3[%c2_53, %c0_54, %c0_55] : memref<3x128x128xbf16, #tpu.memory_space<vmem>>, vector<1x128x128xbf16>
    %52 = vector.shape_cast %51 : vector<1x128x128xbf16> to vector<128x128xbf16>
    %cst_56 = arith.constant dense<0.000000e+00> : vector<32x128xf32>
    %53 = tpu.matmul %50, %52, %cst_56 {dimension_numbers = #tpu.dot_dimension_numbers<[1], [0], [0], [1], [0, 0, 1, 1], [], []>} : vector<32x128xbf16>, vector<128x128xbf16>, vector<32x128xf32> -> vector<32x128xf32>
    %54 = arith.addf %47, %53 : vector<32x128xf32>
    %cst_57 = arith.constant dense<0.000000e+00> : vector<128xf32>
    %55 = vector.multi_reduction <add>, %54, %cst_57 [0] : vector<32x128xf32> to vector<128xf32>
    %56 = vector.shape_cast %55 : vector<128xf32> to vector<1x128xf32>
    %57 = arith.mulf %54, %54 : vector<32x128xf32>
    %cst_58 = arith.constant dense<0.000000e+00> : vector<128xf32>
    %58 = vector.multi_reduction <add>, %57, %cst_58 [0] : vector<32x128xf32> to vector<128xf32>
    %59 = vector.shape_cast %58 : vector<128xf32> to vector<1x128xf32>
    %60 = tpu.concatenate %56, %59 in 0 : vector<1x128xf32>, vector<1x128xf32> -> vector<2x128xf32>
    %c0_59 = arith.constant 0 : index
    %c0_60 = arith.constant 0 : index
    %61 = vector.load %arg6[%c0_59, %c0_60] : memref<128x128xf32, #tpu.memory_space<vmem>>, vector<128x128xf32>
    %cst_61 = arith.constant dense<0.000000e+00> : vector<2x128xf32>
    %62 = tpu.matmul %60, %61, %cst_61 {dimension_numbers = #tpu.dot_dimension_numbers<[1], [0], [0], [1], [0, 0, 1, 1], [], []>} : vector<2x128xf32>, vector<128x128xf32>, vector<2x128xf32> -> vector<2x128xf32>
    %cst_62 = arith.constant 0.001953125 : f32
    %63 = vector.broadcast %cst_62 : f32 to vector<2x128xf32>
    %64 = arith.mulf %62, %63 : vector<2x128xf32>
    %65 = vector.extract_strided_slice %64 {offsets = [0, 0], sizes = [1, 128], strides = [1, 1]} : vector<2x128xf32> to vector<1x128xf32>
    %66 = vector.extract_strided_slice %64 {offsets = [1, 0], sizes = [1, 128], strides = [1, 1]} : vector<2x128xf32> to vector<1x128xf32>
    %67 = arith.mulf %65, %65 : vector<1x128xf32>
    %68 = arith.subf %66, %67 : vector<1x128xf32>
    %cst_63 = arith.constant 0.000000e+00 : f32
    %69 = vector.broadcast %cst_63 : f32 to vector<1x128xf32>
    %70 = arith.maximumf %68, %69 : vector<1x128xf32>
    %cst_64 = arith.constant 9.99999974E-6 : f32
    %71 = vector.broadcast %cst_64 : f32 to vector<1x128xf32>
    %72 = arith.addf %70, %71 : vector<1x128xf32>
    %73 = math.rsqrt %72 : vector<1x128xf32>
    %c0_65 = arith.constant 0 : index
    %c0_66 = arith.constant 0 : index
    %74 = vector.load %arg4[%c0_65, %c0_66] : memref<1x128xf32, #tpu.memory_space<vmem>>, vector<1x128xf32>
    %75 = arith.mulf %73, %74 : vector<1x128xf32>
    %76 = vector.broadcast %65 : vector<1x128xf32> to vector<32x128xf32>
    %77 = arith.subf %54, %76 : vector<32x128xf32>
    %78 = vector.broadcast %75 : vector<1x128xf32> to vector<32x128xf32>
    %79 = arith.mulf %77, %78 : vector<32x128xf32>
    %c0_67 = arith.constant 0 : index
    %c0_68 = arith.constant 0 : index
    %80 = vector.load %arg5[%c0_67, %c0_68] : memref<1x128xf32, #tpu.memory_space<vmem>>, vector<1x128xf32>
    %81 = vector.broadcast %80 : vector<1x128xf32> to vector<32x128xf32>
    %82 = arith.addf %79, %81 : vector<32x128xf32>
    %c0_69 = arith.constant 0 : index
    %c0_70 = arith.constant 0 : index
    %c0_71 = arith.constant 0 : index
    %83 = vector.load %arg0[%c0_69, %c0_70, %c0_71] : memref<2x16x128xf32, #tpu.memory_space<vmem>>, vector<2x16x128xf32>
    %84 = vector.shape_cast %83 : vector<2x16x128xf32> to vector<32x128xf32>
    %85 = arith.addf %82, %84 : vector<32x128xf32>
    %cst_72 = arith.constant 0.000000e+00 : f32
    %86 = vector.broadcast %cst_72 : f32 to vector<32x128xf32>
    %87 = arith.cmpf oge, %85, %86 : vector<32x128xf32>
    %cst_73 = arith.constant 0.00999999977 : f32
    %88 = vector.broadcast %cst_73 : f32 to vector<32x128xf32>
    %89 = arith.mulf %88, %85 : vector<32x128xf32>
    %90 = arith.select %87, %85, %89 : vector<32x128xi1>, vector<32x128xf32>
    %91 = vector.shape_cast %90 : vector<32x128xf32> to vector<2x16x128xf32>
    %c0_74 = arith.constant 0 : index
    %c0_75 = arith.constant 0 : index
    %c0_76 = arith.constant 0 : index
    %92 = vector.load %arg7[%c0_74, %c0_75, %c0_76] : memref<2x16x128xf32, #tpu.memory_space<vmem>>, vector<2x16x128xf32>
    tpu.vector_store %arg7[%c0_74, %c0_75, %c0_76], %91 {strides = array<i32>} : memref<2x16x128xf32, #tpu.memory_space<vmem>>, vector<2x16x128xf32>,
    return
  }
}

</mosaic_0001>

<bundles_post_ra>
// kernel: residual_layer_forward.1
= control target key start
LH: loop header
LB: loop body
LE: loop exit
PB: predicated region body
PF: predicated region fallthrough
CT: control target
= control target key end

     0   :  { %v1414_v1 = vmov 0.0   ;;  %v1415_v52 = vmov 0.0|0.0   ;;  %vm1416_vm4 = vmmov 0   ;;  %vm814_vm5 = vcmask 1040384   ;;  %s1715_s1 = inlined_call_operand.vmem [shape: bf16[3,128,128], index: 1, kind: input, shape index: {}]   ;;  %s1716_s0 = inlined_call_operand.vmem [shape: f32[2,16,128], index: 0, kind: input, shape index: {}]   ;;  %s1717_s3 = inlined_call_operand.vmem [shape: bf16[3,128,128], index: 3, kind: input, shape index: {}]   ;;  %s1718_s6 = inlined_call_operand.vmem [shape: f32[128,128], index: 6, kind: input, shape index: {}]   ;;  %s1719_s2 = inlined_call_operand.vmem [shape: f32[1,128], index: 2, kind: input, shape index: {}]   ;;  %s1720_s4 = inlined_call_operand.vmem [shape: f32[1,128], index: 4, kind: input, shape index: {}]   ;;  %s1721_s5 = inlined_call_operand.vmem [shape: f32[1,128], index: 5, kind: input, shape index: {}]   ;;  %s1722_s7 = inlined_call_operand.vmem [shape: f32[2,16,128], index: 7, kind: output, shape index: {}]  }
   0x1   :  { %v1364_v0 = vld [vmem:[%s1715_s1 + $0x40] sm:$0xff]   ;;  %27 = vst [vmem:[#allocation2] sm:$0x1] %v1414_v1  ;;  %28 = vst [vmem:[#allocation2 + $0x18] sm:$0x1] %v1414_v1  ;;  %v1365_v2 = vld [vmem:[%s1715_s1 + $0x48] sm:$0xff]  }
   0x2   :  { %29 = vst [vmem:[#allocation2 + $0x11] sm:$0x1] %v1414_v1  ;;  %30 = vst [vmem:[#allocation2 + $0x29] sm:$0x1] %v1414_v1  ;;  %1166 = vmatprep.subr.bf16.mxu0 %v1364_v0  ;;  %v1366_v3 = vld [vmem:[%s1715_s1 + $0x50] sm:$0xff]   ;;  %v1367_v4 = vld [vmem:[%s1715_s1 + $0x58] sm:$0xff]  }
   0x3   :  { %1167 = vmatpush3.bf16.msra.mxu0 %v1364_v0  ;;  %v1476_v5 = vld [vmem:[%s1716_s0] sm:$0xff]  ;;  %v1481_v6 = vld [vmem:[%s1716_s0 + $0x8] sm:$0xff]  ;;  %v1490_v8 = vld [vmem:[%s1716_s0 + $0x10] sm:$0xff] }
   0x4   :  { %1168 = vmatprep.subr.bf16.mxu0 %v1365_v2  ;;  %35 = vst [vmem:[#allocation2 + $0x1] sm:$0xff] %v1476_v5  ;;  %36 = vst [vmem:[#allocation2 + $0x9] sm:$0xff] %v1481_v6  ;;  %v65_v7 = vpack.c.bf16 %v1481_v6, %v1476_v5  ;;  %v1495_v9 = vld [vmem:[%s1716_s0 + $0x18] sm:$0xff]  ;;  %v1368_v10 = vld [vmem:[%s1715_s1 + $0x60] sm:$0xff]  }
   0x5   :  { %37 = vst [vmem:[#allocation2 + $0x19] sm:$0xff] %v1490_v8  ;;  %38 = vst [vmem:[#allocation2 + $0x21] sm:$0xff] %v1495_v9  ;;  %v1369_v11 = vld [vmem:[%s1715_s1 + $0x68] sm:$0xff]   ;;  %v1370_v12 = vld [vmem:[%s1715_s1 + $0x70] sm:$0xff]   ;;  %v66_v19 = vpack.c.bf16 %v1495_v9, %v1490_v8 }
   0x6   :  { %1182 = vmatprep.mubr.bf16.mxu0 %v65_v7  ;;  %v1371_v13 = vld [vmem:[%s1715_s1 + $0x78] sm:$0xff]   ;;  %v1372_v14 = vld [vmem:[%s1715_s1] sm:$0xff]   ;;  %v1389_v18 = vld [vmem:[%s1717_s3 + $0x48] sm:$0xff]  }
   0x7   :  { %1169 = vmatpush3.bf16.msra.mxu0 %v1365_v2  ;;  %v1388_v17 = vld [vmem:[%s1717_s3 + $0x40] sm:$0xff]   ;;  %v1373_v20 = vld [vmem:[%s1715_s1 + $0x8] sm:$0xff]   ;;  %v1390_v22 = vld [vmem:[%s1717_s3 + $0x50] sm:$0xff]  }
   0x8   :  { %1170 = vmatprep.subr.bf16.mxu0 %v1366_v3  ;;  %1226 = vmatprep.subr.bf16.mxu1 %v1388_v17  ;;  %v1374_v23 = vld [vmem:[%s1715_s1 + $0x10] sm:$0xff]   ;;  %v1391_v24 = vld [vmem:[%s1717_s3 + $0x58] sm:$0xff]   ;;  %v1376_v26 = vld [vmem:[%s1715_s1 + $0x20] sm:$0xff]  }
   0x9   :  { %1227 = vmatpush3.bf16.msra.mxu1 %v1388_v17  ;;  %v1375_v25 = vld [vmem:[%s1715_s1 + $0x18] sm:$0xff]   ;;  %v1377_v27 = vld [vmem:[%s1715_s1 + $0x28] sm:$0xff]   ;;  %v1378_v28 = vld [vmem:[%s1715_s1 + $0x30] sm:$0xff]  }
   0xa   :  { %1228 = vmatprep.subr.bf16.mxu1 %v1389_v18  ;;  %v1379_v29 = vld [vmem:[%s1715_s1 + $0x38] sm:$0xff]   ;;  %v1380_v32 = vld [vmem:[%s1715_s1 + $0x80] sm:$0xff]   ;;  %v1381_v37 = vld [vmem:[%s1715_s1 + $0x88] sm:$0xff]  }
   0xb   :  { %1171 = vmatpush3.bf16.msra.mxu0 %v1366_v3  ;;  %v39_v15 = vld [vmem:[#allocation2] sm:$0xff]  ;;  %v40_v16 = vld [vmem:[#allocation2 + $0x8] sm:$0xff]  ;;  %v1382_v38 = vld [vmem:[%s1715_s1 + $0x90] sm:$0xff]  }
   0xc   :  { %1172 = vmatprep.subr.bf16.mxu0 %v1367_v4  ;;  %v43_v21 = vpack.c.bf16 %v40_v16, %v39_v15  ;;  %v41_v30 = vld [vmem:[#allocation2 + $0x18] sm:$0xff]  ;;  %v42_v31 = vld [vmem:[#allocation2 + $0x20] sm:$0xff]  ;;  %v279_v34 = vld [vmem:[#allocation2 + $0xa] sm:$0xff] }
   0xd   :  { %1229 = vmatpush3.bf16.msra.mxu1 %v1389_v18  ;;  %v278_v33 = vld [vmem:[#allocation2 + $0x2] sm:$0xff]  ;;  %v44_v35 = vpack.c.bf16 %v42_v31, %v41_v30  ;;  %v1383_v39 = vld [vmem:[%s1715_s1 + $0x98] sm:$0xff]   ;;  %v1386_v42 = vld [vmem:[%s1715_s1 + $0xb0] sm:$0xff]  }
   0xe   :  { %1230 = vmatprep.subr.bf16.mxu1 %v1390_v22  ;;  %v282_v36 = vpack.c.bf16 %v279_v34, %v278_v33  ;;  %v1384_v40 = vld [vmem:[%s1715_s1 + $0xa0] sm:$0xff]   ;;  %v1385_v41 = vld [vmem:[%s1715_s1 + $0xa8] sm:$0xff]   ;;  %v1387_v43 = vld [vmem:[%s1715_s1 + $0xb8] sm:$0xff]  }
   0xf   :  { %1173 = vmatpush3.bf16.msra.mxu0 %v1367_v4  ;;  %v280_v44 = vld [vmem:[#allocation2 + $0x1a] sm:$0xff]  ;;  %v281_v45 = vld [vmem:[#allocation2 + $0x22] sm:$0xff]  ;;  %v1394_v49 = vld [vmem:[%s1717_s3 + $0x70] sm:$0xff]  }
  0x10   :  { %1174 = vmatprep.subr.bf16.mxu0 %v1368_v10  ;;  %v283_v46 = vpack.c.bf16 %v281_v45, %v280_v44  ;;  %v1392_v47 = vld [vmem:[%s1717_s3 + $0x60] sm:$0xff]   ;;  %v1393_v48 = vld [vmem:[%s1717_s3 + $0x68] sm:$0xff]   ;;  %v1395_v50 = vld [vmem:[%s1717_s3 + $0x78] sm:$0xff]  }
  0x11   :  { %1231 = vmatpush3.bf16.msra.mxu1 %v1390_v22  ;;  %v1396_v51 = vld [vmem:[%s1717_s3] sm:$0xff]   ;;  %v817_v54 = vld [vmem:[%s1718_s6 + $0x8] sm:$0xff]  ;;  %v818_v55 = vld [vmem:[%s1718_s6 + $0x10] sm:$0xff] }
  0x12   :  { %1232 = vmatprep.subr.bf16.mxu1 %v1391_v24  ;;  %v816_v53 = vld [vmem:[%s1718_s6] sm:$0xff]  ;;  %v819_v57 = vld [vmem:[%s1718_s6 + $0x18] sm:$0xff] }
  0x13   :  { %1175 = vmatpush3.bf16.msra.mxu0 %v1368_v10  ;;  %v1322_v56 = vpack.c.bf16 %v817_v54, %v816_v53  ;;  %v1325_v58 = vpack.c.bf16 %v819_v57, %v818_v55  ;;  %v1030_v59 = vld [vmem:[%s1719_s2] ss:$0 sm:$0xff]  ;;  %v825_v54 = vld [vmem:[%s1718_s6 + $0x48] sm:$0xff]  ;;  %v827_v57 = vld [vmem:[%s1718_s6 + $0x58] sm:$0xff] }
  0x14   :  { %1176 = vmatprep.subr.bf16.mxu0 %v1369_v11  ;;  %v824_v53 = vld [vmem:[%s1718_s6 + $0x40] sm:$0xff] }
  0x15   :  { %1233 = vmatpush3.bf16.msra.mxu1 %v1391_v24  ;;  %v1399_v24 = vld [vmem:[%s1717_s3 + $0x18] sm:$0xff]   ;;  %v1334_v55 = vpack.c.bf16 %v825_v54, %v824_v53  ;;  %v1088_v53 = vld [vmem:[%s1721_s5] ss:$0 sm:$0xff] }
  0x16   :  { %1234 = vmatprep.subr.bf16.mxu1 %v1392_v47 }
  0x17   :  { %1177 = vmatpush3.bf16.msra.mxu0 %v1369_v11 }
  0x18   :  { %1178 = vmatprep.subr.bf16.mxu0 %v1370_v12 }
  0x19   :  { %1235 = vmatpush3.bf16.msra.mxu1 %v1392_v47  ;;  %v821_v47 = vld [vmem:[%s1718_s6 + $0x28] sm:$0xff] }
  0x1a   :  { %1236 = vmatprep.subr.bf16.mxu1 %v1393_v48 }
  0x1b   :  { %1179 = vmatpush3.bf16.msra.mxu0 %v1370_v12 }
  0x1c   :  { %1180 = vmatprep.subr.bf16.mxu0 %v1371_v13 }
  0x1d   :  { %1237 = vmatpush3.bf16.msra.mxu1 %v1393_v48 }
  0x1e   :  { %1238 = vmatprep.subr.bf16.mxu1 %v1394_v49 }
  0x1f   :  { %1181 = vmatpush3.bf16.msra.mxu0 %v1371_v13 }
  0x20   :  { %1186 = vmatprep.subr.bf16.mxu0 %v1372_v14 }
  0x21   :  { %1239 = vmatpush3.bf16.msra.mxu1 %v1394_v49  ;;  %v822_v49 = vld [vmem:[%s1718_s6 + $0x30] sm:$0xff] }
  0x22   :  { %1183 = vmatmul.mubr.bf16.vlgmr.msra.gmra.mrb[0].mxu0 %v66_v19  ;;  %1240 = vmatprep.subr.bf16.mxu1 %v1395_v50  ;;  %v1397_v19 = vld [vmem:[%s1717_s3 + $0x8] sm:$0xff]  }
  0x23   :  { %1187 = vmatpush3.bf16.msra.mxu0 %v1372_v14  ;;  %1202 = vmatprep.mubr.bf16.mxu0 %v43_v21 }
  0x24   :  { %1188 = vmatprep.subr.bf16.mxu0 %v1373_v20 }
  0x25   :  { %1241 = vmatpush3.bf16.msra.mxu1 %v1395_v50  ;;  %v823_v50 = vld [vmem:[%s1718_s6 + $0x38] sm:$0xff] }
  0x26   :  { %1246 = vmatprep.subr.bf16.mxu1 %v1396_v51 }
  0x27   :  { %1189 = vmatpush3.bf16.msra.mxu0 %v1373_v20  ;;  %v1398_v20 = vld [vmem:[%s1717_s3 + $0x10] sm:$0xff]  }
  0x28   :  { %1190 = vmatprep.subr.bf16.mxu0 %v1374_v23 }
  0x2b   :  { %1191 = vmatpush3.bf16.msra.mxu0 %v1374_v23 }
  0x2c   :  { %1192 = vmatprep.subr.bf16.mxu0 %v1375_v25 }
  0x2f   :  { %1193 = vmatpush3.bf16.msra.mxu0 %v1375_v25  ;;  %v1400_v25 = vld [vmem:[%s1717_s3 + $0x20] sm:$0xff]  }
  0x30   :  { %1194 = vmatprep.subr.bf16.mxu0 %v1376_v26 }
  0x33   :  { %1195 = vmatpush3.bf16.msra.mxu0 %v1376_v26  ;;  %v1401_v26 = vld [vmem:[%s1717_s3 + $0x28] sm:$0xff]  }
  0x34   :  { %1196 = vmatprep.subr.bf16.mxu0 %v1377_v27 }
  0x37   :  { %1197 = vmatpush3.bf16.msra.mxu0 %v1377_v27  ;;  %v1402_v27 = vld [vmem:[%s1717_s3 + $0x30] sm:$0xff]  }
  0x38   :  { %1198 = vmatprep.subr.bf16.mxu0 %v1378_v28 }
  0x3b   :  { %1199 = vmatpush3.bf16.msra.mxu0 %v1378_v28  ;;  %v1403_v28 = vld [vmem:[%s1717_s3 + $0x38] sm:$0xff]  }
  0x3c   :  { %1200 = vmatprep.subr.bf16.mxu0 %v1379_v29 }
  0x3f   :  { %1201 = vmatpush3.bf16.msra.mxu0 %v1379_v29  ;;  %v1404_v29 = vld [vmem:[%s1717_s3 + $0x80] sm:$0xff]  }
  0x40   :  { %1206 = vmatprep.subr.bf16.mxu0 %v1380_v32 }
  0x42   :  { %1203 = vmatmul.mubr.bf16.vlgmr.msra.gmra.mrb[0].mxu0 %v44_v35  ;;  %v1405_v35 = vld [vmem:[%s1717_s3 + $0x88] sm:$0xff]  }
  0x43   :  { %1207 = vmatpush3.bf16.msra.mxu0 %v1380_v32  ;;  %1222 = vmatprep.mubr.bf16.mxu0 %v282_v36 }
  0x44   :  { %1208 = vmatprep.subr.bf16.mxu0 %v1381_v37 }
  0x47   :  { %1209 = vmatpush3.bf16.msra.mxu0 %v1381_v37  ;;  %v1406_v37 = vld [vmem:[%s1717_s3 + $0x90] sm:$0xff]  }
  0x48   :  { %1210 = vmatprep.subr.bf16.mxu0 %v1382_v38 }
  0x4b   :  { %1211 = vmatpush3.bf16.msra.mxu0 %v1382_v38  ;;  %v1407_v38 = vld [vmem:[%s1717_s3 + $0x98] sm:$0xff]  }
  0x4c   :  { %1212 = vmatprep.subr.bf16.mxu0 %v1383_v39 }
  0x4f   :  { %1213 = vmatpush3.bf16.msra.mxu0 %v1383_v39  ;;  %v1408_v39 = vld [vmem:[%s1717_s3 + $0xa0] sm:$0xff]  }
  0x50   :  { %1214 = vmatprep.subr.bf16.mxu0 %v1384_v40 }
  0x53   :  { %1215 = vmatpush3.bf16.msra.mxu0 %v1384_v40  ;;  %v1409_v40 = vld [vmem:[%s1717_s3 + $0xa8] sm:$0xff]  }
  0x54   :  { %1216 = vmatprep.subr.bf16.mxu0 %v1385_v41 }
  0x57   :  { %1217 = vmatpush3.bf16.msra.mxu0 %v1385_v41  ;;  %v1410_v41 = vld [vmem:[%s1717_s3 + $0xb0] sm:$0xff]  }
  0x58   :  { %1218 = vmatprep.subr.bf16.mxu0 %v1386_v42 }
  0x5b   :  { %1219 = vmatpush3.bf16.msra.mxu0 %v1386_v42  ;;  %v1411_v42 = vld [vmem:[%s1717_s3 + $0xb8] sm:$0xff]  }
  0x5c   :  { %1220 = vmatprep.subr.bf16.mxu0 %v1387_v43 }
  0x5f   :  { %1221 = vmatpush3.bf16.msra.mxu0 %v1387_v43 }
  0x60   :  { %1321 = vmatprep.subr.bf16.mxu0 %v1415_v52 }
  0x62   :  { %1223 = vmatmul.mubr.bf16.vlgmr.msra.gmra.mrb[0].mxu0 %v283_v46  ;;  %v820_v46 = vld [vmem:[%s1718_s6 + $0x20] sm:$0xff] }
  0x63   :  { %1323 = vmatpush3.bf16.msra.mxu0 %v1322_v56  ;;  %v1328_v48 = vpack.c.bf16 %v821_v47, %v820_v46  ;;  %v826_v56 = vld [vmem:[%s1718_s6 + $0x50] sm:$0xff]  ;;  %1318 = vmatprep.mubr.msk.f32.mxu0 %vm1416_vm4, %v1414_v1  ;;  %v1087_v47 = vld [vmem:[%s1720_s4] ss:$0 sm:$0xff] }
  0x64   :  { %1324 = vmatprep.subr.bf16.mxu0 %v1415_v52 }
  0x67   :  { %1326 = vmatpush3.bf16.msra.mxu0 %v1325_v58  ;;  %v1337_v58 = vpack.c.bf16 %v827_v57, %v826_v56 }
  0x68   :  { %1327 = vmatprep.subr.bf16.mxu0 %v1415_v52 }
  0x6b   :  { %1329 = vmatpush3.bf16.msra.mxu0 %v1328_v48 }
  0x6c   :  { %1330 = vmatprep.subr.bf16.mxu0 %v1415_v52 }
 0x135   :  { %v1224_v60 = vpop.f32.mrb[0].mxu0 }
 0x136   :  { %v411_v61 = vadd.f32 %v1224_v60, %v1030_v59  ;;  %v383_v62 = vpop.f32.mrb[1].mxu0  ;;  %v829_v60 = vld [vmem:[%s1718_s6 + $0x68] sm:$0xff] }
 0x137   :  { %v409_v63 = vadd.f32 %v1030_v59, %v383_v62  ;;  %v1225_v0 = vpop.f32.mrb[2].mxu0  ;;  %v830_v62 = vld [vmem:[%s1718_s6 + $0x70] sm:$0xff] }
 0x138   :  { %vm415_vm0 = vcmp.ge.f32.partialorder %v411_v61, 0.0  ;;  %v419_v2 = vmul.f32 0.01, %v411_v61  ;;  %v412_v3 = vadd.f32 %v1225_v0, %v1030_v59  ;;  %v386_v4 = vpop.f32.mrb[3].mxu0 }
 0x139   :  { %vm413_vm1 = vcmp.ge.f32.partialorder %v409_v63, 0.0  ;;  %v417_v7 = vmul.f32 0.01, %v409_v63  ;;  %v410_v10 = vadd.f32 %v1030_v59, %v386_v4  ;;  %v828_v59 = vld [vmem:[%s1718_s6 + $0x60] sm:$0xff] }
 0x13a   :  { %v423_v11 = vsel %vm415_vm0, %v411_v61, %v419_v2  ;;  %vm416_vm2 = vcmp.ge.f32.partialorder %v412_v3, 0.0  ;;  %v420_v12 = vmul.f32 0.01, %v412_v3  ;;  %v1340_v61 = vpack.c.bf16 %v829_v60, %v828_v59 }
 0x13b   :  { %427 = vst [vmem:[#allocation2 + $0x19] sm:$0xff] %v423_v11  ;;  %v421_v13 = vsel %vm413_vm1, %v409_v63, %v417_v7  ;;  %vm414_vm3 = vcmp.ge.f32.partialorder %v410_v10, 0.0  ;;  %v418_v14 = vmul.f32 0.01, %v410_v10  ;;  %v831_v63 = vld [vmem:[%s1718_s6 + $0x78] sm:$0xff] }
 0x13c   :  { %425 = vst [vmem:[#allocation2 + $0x1] sm:$0xff] %v421_v13  ;;  %v424_v15 = vsel %vm416_vm2, %v412_v3, %v420_v12  ;;  %v1343_v0 = vpack.c.bf16 %v831_v63, %v830_v62 }
 0x13d   :  { %428 = vst [vmem:[#allocation2 + $0x21] sm:$0xff] %v424_v15  ;;  %v422_v16 = vsel %vm414_vm3, %v410_v10, %v418_v14  ;;  %v456_v17 = vpack.c.bf16 %v424_v15, %v423_v11 }
 0x13e   :  { %426 = vst [vmem:[#allocation2 + $0x9] sm:$0xff] %v422_v16  ;;  %v455_v18 = vpack.c.bf16 %v422_v16, %v421_v13 }
 0x140   :  { %1242 = vmatprep.mubr.bf16.mxu1 %v455_v18 }
 0x141   :  { %1243 = vmatmul.mubr.bf16.vlgmr.msra.gmra.mrb[0].mxu1 %v456_v17 }
 0x142   :  { %1247 = vmatpush3.bf16.msra.mxu1 %v1396_v51  ;;  %v431_v33 = vld [vmem:[#allocation2 + $0x18] sm:$0xff]  ;;  %v1331_v51 = vpack.c.bf16 %v823_v50, %v822_v49 }
 0x143   :  { %1248 = vmatprep.subr.bf16.mxu1 %v1397_v19  ;;  %v429_v21 = vld [vmem:[#allocation2] sm:$0xff] }
 0x144   :  { %v432_v30 = vld [vmem:[#allocation2 + $0x20] sm:$0xff]  ;;  %1332 = vmatpush3.bf16.msra.mxu0 %v1331_v51 }
 0x145   :  { %v430_v22 = vld [vmem:[#allocation2 + $0x8] sm:$0xff]  ;;  %v434_v34 = vpack.c.bf16 %v432_v30, %v431_v33  ;;  %v670_v43 = vld [vmem:[#allocation2 + $0x1a] sm:$0xff]  ;;  %1333 = vmatprep.subr.bf16.mxu0 %v1415_v52 }
 0x146   :  { %v433_v23 = vpack.c.bf16 %v430_v22, %v429_v21  ;;  %1249 = vmatpush3.bf16.msra.mxu1 %v1397_v19  ;;  %v668_v31 = vld [vmem:[#allocation2 + $0x2] sm:$0xff]  ;;  %v669_v32 = vld [vmem:[#allocation2 + $0xa] sm:$0xff] }
 0x147   :  { %1250 = vmatprep.subr.bf16.mxu1 %v1398_v20  ;;  %v672_v36 = vpack.c.bf16 %v669_v32, %v668_v31  ;;  %v671_v44 = vld [vmem:[#allocation2 + $0x22] sm:$0xff]  ;;  %v919_v31 = vlaneseq }
 0x148   :  { %1262 = vmatprep.mubr.bf16.mxu1 %v433_v23  ;;  %v673_v45 = vpack.c.bf16 %v671_v44, %v670_v43  ;;  %1335 = vmatpush3.bf16.msra.mxu0 %v1334_v55 }
 0x149   :  { %1336 = vmatprep.subr.bf16.mxu0 %v1415_v52  ;;  %v920_v32 = vshrl.u32 %v919_v31, 7 }
 0x14a   :  { %1251 = vmatpush3.bf16.msra.mxu1 %v1398_v20 }
 0x14b   :  { %1252 = vmatprep.subr.bf16.mxu1 %v1399_v24  ;;  %v921_v33 = vsub.s32 0, %v920_v32  ;;  %v929_v48 = vsub.s32 1, %v920_v32 }
 0x14c   :  { %1338 = vmatpush3.bf16.msra.mxu0 %v1337_v58 }
 0x14d   :  { %1339 = vmatprep.subr.bf16.mxu0 %v1415_v52 }
 0x14e   :  { %1253 = vmatpush3.bf16.msra.mxu1 %v1399_v24 }
 0x14f   :  { %1254 = vmatprep.subr.bf16.mxu1 %v1400_v25 }
 0x150   :  { %1341 = vmatpush3.bf16.msra.mxu0 %v1340_v61 }
 0x151   :  { %1342 = vmatprep.subr.bf16.mxu0 %v1415_v52 }
 0x152   :  { %1255 = vmatpush3.bf16.msra.mxu1 %v1400_v25 }
 0x153   :  { %1256 = vmatprep.subr.bf16.mxu1 %v1401_v26 }
 0x154   :  { %1344 = vmatpush3.bf16.msra.mxu0 %v1343_v0 }
 0x156   :  { %1257 = vmatpush3.bf16.msra.mxu1 %v1401_v26 }
 0x157   :  { %1258 = vmatprep.subr.bf16.mxu1 %v1402_v27 }
 0x15a   :  { %1259 = vmatpush3.bf16.msra.mxu1 %v1402_v27 }
 0x15b   :  { %1260 = vmatprep.subr.bf16.mxu1 %v1403_v28 }
 0x15e   :  { %1261 = vmatpush3.bf16.msra.mxu1 %v1403_v28 }
 0x15f   :  { %1266 = vmatprep.subr.bf16.mxu1 %v1404_v29 }
 0x161   :  { %1263 = vmatmul.mubr.bf16.vlgmr.msra.gmra.mrb[0].mxu1 %v434_v34 }
 0x162   :  { %1267 = vmatpush3.bf16.msra.mxu1 %v1404_v29  ;;  %1282 = vmatprep.mubr.bf16.mxu1 %v672_v36 }
 0x163   :  { %1268 = vmatprep.subr.bf16.mxu1 %v1405_v35 }
 0x166   :  { %1269 = vmatpush3.bf16.msra.mxu1 %v1405_v35 }
 0x167   :  { %1270 = vmatprep.subr.bf16.mxu1 %v1406_v37 }
 0x16a   :  { %1271 = vmatpush3.bf16.msra.mxu1 %v1406_v37 }
 0x16b   :  { %1272 = vmatprep.subr.bf16.mxu1 %v1407_v38 }
 0x16e   :  { %1273 = vmatpush3.bf16.msra.mxu1 %v1407_v38 }
 0x16f   :  { %1274 = vmatprep.subr.bf16.mxu1 %v1408_v39 }
 0x172   :  { %1275 = vmatpush3.bf16.msra.mxu1 %v1408_v39 }
 0x173   :  { %1276 = vmatprep.subr.bf16.mxu1 %v1409_v40 }
 0x176   :  { %1277 = vmatpush3.bf16.msra.mxu1 %v1409_v40 }
 0x177   :  { %1278 = vmatprep.subr.bf16.mxu1 %v1410_v41 }
 0x17a   :  { %1279 = vmatpush3.bf16.msra.mxu1 %v1410_v41 }
 0x17b   :  { %1280 = vmatprep.subr.bf16.mxu1 %v1411_v42 }
 0x17e   :  { %1281 = vmatpush3.bf16.msra.mxu1 %v1411_v42 }
 0x181   :  { %1283 = vmatmul.mubr.bf16.vlgmr.msra.gmra.mrb[0].mxu1 %v673_v45 }
 0x254   :  { %v1284_v2 = vpop.f32.mrb[0].mxu1 }
 0x255   :  { %v773_v3 = vpop.f32.mrb[1].mxu1  ;;  %v803_v13 = vmul.f32 %v1284_v2, %v1284_v2 }
 0x256   :  { %v1285_v4 = vpop.f32.mrb[2].mxu1  ;;  %v801_v10 = vmul.f32 %v773_v3, %v773_v3 }
 0x257   :  { %v776_v7 = vpop.f32.mrb[3].mxu1  ;;  %v804_v16 = vmul.f32 %v1285_v4, %v1285_v4 }
 0x258   :  { %v792_v11 = vadd.f32 %v776_v7, %v773_v3  ;;  %v802_v12 = vmul.f32 %v776_v7, %v776_v7 }
 0x25a   :  { %v793_v14 = vadd.f32 %v1284_v2, %v792_v11  ;;  %v805_v15 = vadd.f32 %v802_v12, %v801_v10 }
 0x25c   :  { %v794_v17 = vadd.f32 %v1285_v4, %v793_v14  ;;  %v806_v18 = vadd.f32 %v805_v15, %v803_v13 }
 0x25e   :  { %v795_v19 = vrot.slane %v794_v17, 4  ;;  %v807_v1 = vadd.f32 %v806_v18, %v804_v16 }
 0x260   :  { %v796_v20 = vadd.f32 %v795_v19, %v794_v17  ;;  %v808_v21 = vrot.slane %v807_v1, 4 }
 0x262   :  { %v797_v22 = vrot.slane %v796_v20, 2  ;;  %v809_v52 = vadd.f32 %v808_v21, %v807_v1 }
 0x264   :  { %v798_v23 = vadd.f32 %v797_v22, %v796_v20  ;;  %v810_v24 = vrot.slane %v809_v52, 2 }
 0x266   :  { %v799_v25 = vrot.slane %v798_v23, 1  ;;  %v811_v26 = vadd.f32 %v810_v24, %v809_v52 }
 0x268   :  { %v812_v27 = vrot.slane %v811_v26, 1  ;;  %v800_v28 = vadd.f32 %v799_v25, %v798_v23 }
 0x26a   :  { %v813_v29 = vadd.f32 %v812_v27, %v811_v26 }
 0x26c   :  { %v815_v30 = vsel %vm814_vm5, %v800_v28, %v813_v29 }
 0x26d   :  { %1319 = vmatmul.mubr.f32.vlgmr.msra.gmra.mrb[4].mxu0 %v815_v30 }
 0x340   :  { %v898_v34 = vpop.f32.mrb[4].mxu0 }
 0x341   :  { %v902_v35 = vmul.f32 0.001953125, %v898_v34  ;;  %v1320_v36 = vpop.f32.mrb[5].mxu0 }
 0x343   :  { %v903_v37 = vmul.f32 %v902_v35, %v902_v35  ;;  %v922_v38 = vrot.slane %v902_v35, %v921_v33 }
 0x345   :  { %v905_v39 = vrot.slane %v903_v37, 7  ;;  %v923_v40 = vsub.f32 %v773_v3, %v922_v38  ;;  %v924_v41 = vsub.f32 %v776_v7, %v922_v38  ;;  %v925_v42 = vsub.f32 %v1284_v2, %v922_v38 }
 0x346   :  { %v926_v43 = vsub.f32 %v1285_v4, %v922_v38 }
 0x347   :  { %v907_v44 = vsub.f32 %v902_v35, %v905_v39 }
 0x349   :  { %v908_v45 = vmax.f32 %v907_v44, 0.0 }
 0x34b   :  { %v909_v46 = vadd.f32 1e-05, %v908_v45 }
 0x34d   :  { %1412 = vrsqrt.f32 %v909_v46 }
 0x357   :  { %v1413_v49 = vpop.eup %1412 }
 0x358   :  { %v918_v50 = vmul.f32 %v1413_v49, %v1087_v47 }
 0x35a   :  { %v930_v51 = vrot.slane %v918_v50, %v929_v48 }
 0x35c   :  { %v931_v54 = vmul.f32 %v930_v51, %v923_v40  ;;  %v932_v55 = vmul.f32 %v930_v51, %v924_v41  ;;  %v933_v56 = vmul.f32 %v930_v51, %v925_v42  ;;  %v934_v57 = vmul.f32 %v930_v51, %v926_v43 }
 0x35e   :  { %v942_v58 = vadd.f32 %v1088_v53, %v931_v54  ;;  %v943_v59 = vadd.f32 %v1088_v53, %v932_v55  ;;  %v944_v60 = vadd.f32 %v1088_v53, %v933_v56  ;;  %v945_v61 = vadd.f32 %v1088_v53, %v934_v57 }
 0x360   :  { %v950_v62 = vadd.f32 %v942_v58, %v1476_v5  ;;  %v951_v63 = vadd.f32 %v943_v59, %v1481_v6  ;;  %v952_v0 = vadd.f32 %v944_v60, %v1490_v8  ;;  %v953_v2 = vadd.f32 %v945_v61, %v1495_v9 }
 0x362   :  { %vm954_vm6 = vcmp.ge.f32.partialorder %v950_v62, 0.0  ;;  %vm955_vm7 = vcmp.ge.f32.partialorder %v951_v63, 0.0  ;;  %vm956_vm8 = vcmp.ge.f32.partialorder %v952_v0, 0.0  ;;  %vm957_vm9 = vcmp.ge.f32.partialorder %v953_v2, 0.0 }
 0x363   :  { %v958_v3 = vmul.f32 0.01, %v950_v62  ;;  %v959_v4 = vmul.f32 0.01, %v951_v63  ;;  %v960_v7 = vmul.f32 0.01, %v952_v0 }
 0x364   :  { %v961_v10 = vmul.f32 0.01, %v953_v2 }
 0x365   :  { %v962_v11 = vsel %vm954_vm6, %v950_v62, %v958_v3  ;;  %v963_v12 = vsel %vm955_vm7, %v951_v63, %v959_v4  ;;  %v964_v13 = vsel %vm956_vm8, %v952_v0, %v960_v7 }
 0x366   :  { %v965_v14 = vsel %vm957_vm9, %v953_v2, %v961_v10  ;;  %966 = vst [vmem:[%s1722_s7] sm:$0xff] %v962_v11  ;;  %967 = vst [vmem:[%s1722_s7 + $0x8] sm:$0xff] %v963_v12 }
 0x367   :  { %968 = vst [vmem:[%s1722_s7 + $0x10] sm:$0xff] %v964_v13  ;;  %969 = vst [vmem:[%s1722_s7 + $0x18] sm:$0xff] %v965_v14 }

</bundles_post_ra>
